<compile_context>
chip_gen: v7x
topology: tpu7x:2x2x1
jax: 0.10.0
libtpu: 0.0.40
codegen_flags: <defaults>
</compile_context>

<pallas_src>
import jax
import jax.numpy as jnp
from jax import lax
from jax.experimental import pallas as pl
from jax.experimental.pallas import tpu as pltpu

_MIB = 1024 * 1024


def _fused_linear_kernel(x_ref, w_ref, b_ref, o_ref):
    """One (tm, tn) output tile:  (tm, D) @ (D, tn) + bias(1, tn)."""
    acc = jnp.dot(x_ref[...], w_ref[...], preferred_element_type=jnp.float32)
    o_ref[...] = (acc + b_ref[...]).astype(o_ref.dtype)


def _choose_tiles(M, D, Kout, in_bytes, out_bytes, *, tn_cap=1024,
                  vmem_budget=40 * _MIB):
    """Pick (tm, tn) so W is streamed once when possible and VMEM fits."""
    # Lane (last-dim) tile: full Kout when small (always a legal block shape),
    # otherwise a lane-dense multiple of 128; partial edge blocks are masked.
    tn = Kout if Kout <= tn_cap else tn_cap

    # Row tile: as big as the double-buffered working set allows, so the large
    # W operand (D*Kout) is read exactly once when M fits in a single block.
    row_align = 16 if in_bytes < 4 else 8          # bf16 packs 16 rows/sublane
    per_row = 2 * (D * in_bytes + tn * out_bytes)  # X tile + out tile, x2 bufs
    fixed = 2 * (D * tn * in_bytes + tn * 4)       # W tile + bias row, x2 bufs
    tm_max = max(row_align, (vmem_budget - fixed) // per_row)
    tm = M if M <= tm_max else (tm_max // row_align) * row_align
    return int(tm), int(tn)


def fused_decoder_pred(x2d, w_cat, b_cat, *, compute_dtype=jnp.bfloat16,
                       out_dtype=None, tn_cap=1024, vmem_budget=40 * _MIB):
    """Fused concat-of-linear-heads.

    x2d:   (M, D)
    w_cat: (D, Kout)  -- per-head weights concatenated along the output dim
    b_cat: (1, Kout) or (Kout,)
    Returns (M, Kout); accumulation is always f32 on the MXU.
    """
    M, D = x2d.shape
    Kout = w_cat.shape[1]
    out_dtype = x2d.dtype if out_dtype is None else out_dtype

    # bf16 operands halve the X/W HBM streams (this kernel is bandwidth-bound:
    # D is small). Accumulation stays f32; bias stays f32; output stays
    # out_dtype (pass out_dtype=jnp.bfloat16 if the consumer accepts it).
    if compute_dtype is not None and x2d.dtype != compute_dtype:
        x2d = x2d.astype(compute_dtype)
    if compute_dtype is not None and w_cat.dtype != compute_dtype:
        w_cat = w_cat.astype(compute_dtype)
    b_row = b_cat.reshape(1, Kout).astype(jnp.float32)

    in_bytes = jnp.dtype(x2d.dtype).itemsize
    out_bytes = jnp.dtype(out_dtype).itemsize
    tm, tn = _choose_tiles(M, D, Kout, in_bytes, out_bytes,
                           tn_cap=tn_cap, vmem_budget=vmem_budget)
    grid = (pl.cdiv(M, tm), pl.cdiv(Kout, tn))

    # Double-buffered working set -> VMEM limit (capped for v7x's 64 MiB).
    work_set = 2 * (tm * D * in_bytes + D * tn * in_bytes
                    + tm * tn * out_bytes + tn * 4)
    vmem_limit = int(min(48 * _MIB, max(32 * _MIB, int(work_set * 1.5))))

    cost = pl.CostEstimate(
        flops=2 * M * D * Kout,
        transcendentals=0,
        bytes_accessed=(M * D * in_bytes + D * Kout * in_bytes
                        + Kout * 4 + M * Kout * out_bytes))

    return pl.pallas_call(
        _fused_linear_kernel,
        out_shape=jax.ShapeDtypeStruct((M, Kout), out_dtype),
        grid_spec=pltpu.PrefetchScalarGridSpec(
            num_scalar_prefetch=0,
            grid=grid,
            in_specs=[
                # X row tile: constant block index across j -> stays resident.
                pl.BlockSpec((tm, D), lambda i, j: (i, 0)),
                # W column tile: streamed; read from HBM once when tm >= M.
                pl.BlockSpec((D, tn), lambda i, j: (0, j)),
                # Bias row tile: pipelined like any other input (tiny).
                pl.BlockSpec((1, tn), lambda i, j: (0, j)),
            ],
            out_specs=pl.BlockSpec((tm, tn), lambda i, j: (i, j)),
        ),
        compiler_params=pltpu.CompilerParams(
            # Both axes independent -> shard across TensorCores on v7x.
            dimension_semantics=("parallel", "parallel"),
            vmem_limit_bytes=vmem_limit,
        ),
        cost_estimate=cost,
    )(x2d, w_cat, b_row)


def unetr_decoder_forward(embedding, w_cat, b_cat, *, image_size, patch_size,
                          out_channels, compute_dtype=jnp.bfloat16):
    """Replicates UnetrDecoder.forward semantics exactly.

    embedding: (N, L, D) with L == (image_size // patch_size) ** 3
    w_cat:     (D, out_channels * patch_size**3)   -- [W0 | W1 | ...] concat
    b_cat:     (1, out_channels * patch_size**3)
    returns:   (N, out_channels, image_size, image_size, image_size)
    """
    N, L, D = embedding.shape
    P = patch_size
    C = out_channels
    h = w = d = image_size // P
    assert L == h * w * d, "num_patches must equal (image_size // patch_size)**3"

    # Hot path: fused linear heads on the TPU MXU via Pallas.
    y = fused_decoder_pred(embedding.reshape(N * L, D), w_cat, b_cat,
                           compute_dtype=compute_dtype)
    y = y.reshape(N, L, C * P ** 3)

    # Glue: exact replica of the PyTorch reshape / einsum / reshape (pure
    # permutation, no FLOPs). NOTE: as in the PyTorch module, the last axis is
    # reinterpreted as (P, P, P, C) with C fastest even though the heads were
    # concatenated C-slowest -- we replicate that behavior bit-for-bit.
    # TODO(synk): this full-volume transpose re-reads/writes all N*C*IS^3
    # elements in HBM (~2x end-to-end traffic for a memory-bound op); if the
    # downstream consumer can take the (N, L, C*P^3) layout, skip/fuse it.
    x = y.reshape(N, h, w, d, P, P, P, C)
    x = jnp.einsum('nhwdopqm->nmhowpdq', x)
    x = x.reshape(N, C, image_size, image_size, image_size)
    return x


def _reference_forward(embedding, w_list, b_list, *, image_size, patch_size,
                       out_channels):
    """Pure-jnp reference mirroring the PyTorch code (per-head Linear + cat)."""
    N, L, D = embedding.shape
    P = patch_size
    C = out_channels
    h = w = d = image_size // P
    heads = [jnp.einsum('nld,dk->nlk', embedding, w_list[i],
                        precision=lax.Precision.HIGHEST) + b_list[i]
             for i in range(C)]
    x = jnp.concatenate(heads, axis=2)
    x = x.reshape(N, h, w, d, P, P, P, C)
    x = jnp.einsum('nhwdopqm->nmhowpdq', x)
    x = x.reshape(N, C, image_size, image_size, image_size)
    return x


def _run_case(key, *, image_size, patch_size, out_channels, decoder_embed_dim,
              batch, compute_dtype, atol, rtol):
    num_patches = (image_size // patch_size) ** 3
    P3 = patch_size ** 3

    k_emb, k_w, k_b = jax.random.split(key, 3)
    embedding = jax.random.normal(
        k_emb, (batch, num_patches, decoder_embed_dim), dtype=jnp.float32)
    w_all = 0.02 * jax.random.normal(
        k_w, (out_channels, decoder_embed_dim, P3), dtype=jnp.float32)
    b_all = 0.01 * jax.random.normal(
        k_b, (out_channels, P3), dtype=jnp.float32)

    # Concatenate heads along the output dim, matching torch.cat(..., dim=2).
    w_cat = jnp.concatenate([w_all[i] for i in range(out_channels)], axis=1)
    b_cat = jnp.concatenate([b_all[i] for i in range(out_channels)], axis=0)
    b_cat = b_cat.reshape(1, -1)

    out = unetr_decoder_forward(
        embedding, w_cat, b_cat,
        image_size=image_size, patch_size=patch_size,
        out_channels=out_channels, compute_dtype=compute_dtype)
    out = jax.block_until_ready(out)

    ref = _reference_forward(
        embedding, [w_all[i] for i in range(out_channels)],
        [b_all[i] for i in range(out_channels)],
        image_size=image_size, patch_size=patch_size,
        out_channels=out_channels)
    ref = jax.block_until_ready(ref)

    assert out.shape == (batch, out_channels, image_size, image_size, image_size)
    assert bool(jnp.allclose(out.astype(jnp.float32), ref, atol=atol, rtol=rtol)), (
        f"mismatch: max abs err = {float(jnp.max(jnp.abs(out - ref)))}")


if __name__ == "__main__":
    # Case 1: image_size=16, patch_size=8 -> L=8, Kout=4*512=2048 (tiled Kout).
    # Strict f32 path first, then the default bf16 path (relaxed tolerance:
    # bf16 operands, f32 accumulation).
    _run_case(jax.random.PRNGKey(0),
              image_size=16, patch_size=8, out_channels=4,
              decoder_embed_dim=32, batch=2,
              compute_dtype=jnp.float32, atol=1e-3, rtol=1e-3)
    _run_case(jax.random.PRNGKey(0),
              image_size=16, patch_size=8, out_channels=4,
              decoder_embed_dim=32, batch=2,
              compute_dtype=jnp.bfloat16, atol=1e-2, rtol=1e-2)

    # Case 2: ragged Kout (=3*64=192, not a multiple of 128) exercises the
    # full-dim-block (no-padding) path.
    _run_case(jax.random.PRNGKey(0),
              image_size=8, patch_size=4, out_channels=3,
              decoder_embed_dim=32, batch=2,
              compute_dtype=jnp.float32, atol=1e-3, rtol=1e-3)
    _run_case(jax.random.PRNGKey(0),
              image_size=8, patch_size=4, out_channels=3,
              decoder_embed_dim=32, batch=2,
              compute_dtype=jnp.bfloat16, atol=1e-2, rtol=1e-2)

    print("KERNEL_OK")
</pallas_src>

<mosaic_0001>
module attributes {stable_mosaic.version = 11 : i64} {
  func.func @_fused_linear_kernel(%arg0: i32, %arg1: i32, %arg2: memref<16x32xf32, #tpu.memory_space<vmem>>, %arg3: memref<32x1024xf32, #tpu.memory_space<vmem>>, %arg4: memref<1x1024xf32, #tpu.memory_space<vmem>>, %arg5: memref<16x1024xf32, #tpu.memory_space<vmem>>) attributes {dimension_semantics = [#tpu.dimension_semantics<parallel>, #tpu.dimension_semantics<parallel>], iteration_bounds = array<i64: 1, 2>, scalar_prefetch = 0 : i64, scratch_operands = 0 : i64, tpu.core_type = #tpu.core_type<tc>, window_params = [{transform_indices = @transform_0, window_bounds = array<i64: 16, 32>}, {transform_indices = @transform_1, window_bounds = array<i64: 32, 1024>}, {transform_indices = @transform_2, window_bounds = array<i64: 1, 1024>}, {transform_indices = @transform_3, window_bounds = array<i64: 16, 1024>}]} {
    %c0 = arith.constant 0 : index
    %c0_0 = arith.constant 0 : index
    %0 = vector.load %arg2[%c0, %c0_0] : memref<16x32xf32, #tpu.memory_space<vmem>>, vector<16x32xf32>
    %c0_1 = arith.constant 0 : index
    %c0_2 = arith.constant 0 : index
    %1 = vector.load %arg3[%c0_1, %c0_2] : memref<32x1024xf32, #tpu.memory_space<vmem>>, vector<32x1024xf32>
    %cst = arith.constant dense<0.000000e+00> : vector<16x1024xf32>
    %2 = tpu.matmul %0, %1, %cst {dimension_numbers = #tpu.dot_dimension_numbers<[1], [0], [0], [1], [0, 0, 1, 1], [], []>} : vector<16x32xf32>, vector<32x1024xf32>, vector<16x1024xf32> -> vector<16x1024xf32>
    %c0_3 = arith.constant 0 : index
    %c0_4 = arith.constant 0 : index
    %3 = vector.load %arg4[%c0_3, %c0_4] : memref<1x1024xf32, #tpu.memory_space<vmem>>, vector<1x1024xf32>
    %4 = vector.broadcast %3 : vector<1x1024xf32> to vector<16x1024xf32>
    %5 = arith.addf %2, %4 : vector<16x1024xf32>
    %c0_5 = arith.constant 0 : index
    %c0_6 = arith.constant 0 : index
    %6 = vector.load %arg5[%c0_5, %c0_6] : memref<16x1024xf32, #tpu.memory_space<vmem>>, vector<16x1024xf32>
    tpu.vector_store %arg5[%c0_5, %c0_6], %5 {strides = array<i32>} : memref<16x1024xf32, #tpu.memory_space<vmem>>, vector<16x1024xf32>,
    return
  }
  func.func @transform_0(%arg0: i32, %arg1: i32) -> (i32, i32) {
    %c0_i32 = arith.constant 0 : i32
    %c0_i32_0 = arith.constant 0 : i32
    return %arg0, %c0_i32 : i32, i32
  }
  func.func @transform_1(%arg0: i32, %arg1: i32) -> (i32, i32) {
    %c0_i32 = arith.constant 0 : i32
    %c0_i32_0 = arith.constant 0 : i32
    return %c0_i32, %arg1 : i32, i32
  }
  func.func @transform_2(%arg0: i32, %arg1: i32) -> (i32, i32) {
    %c0_i32 = arith.constant 0 : i32
    %c0_i32_0 = arith.constant 0 : i32
    return %c0_i32, %arg1 : i32, i32
  }
  func.func @transform_3(%arg0: i32, %arg1: i32) -> (i32, i32) {
    %c0_i32 = arith.constant 0 : i32
    return %arg0, %arg1 : i32, i32
  }
}

</mosaic_0001>

<bundles_post_ra>
// kernel: tpu_custom_call.1
= control target key start
LH: loop header
LB: loop body
LE: loop exit
PB: predicated region body
PF: predicated region fallthrough
CT: control target
= control target key end

     0   :  { %s1496_s0 = inlined_call_operand.hbm [shape: f32[16,32], index: 0, kind: input, shape index: {}]   ;;  %s1497_s1 = inlined_call_operand.hbm [shape: f32[32,2048], index: 1, kind: input, shape index: {}]   ;;  %s1498_s2 = inlined_call_operand.hbm [shape: f32[1,2048], index: 2, kind: input, shape index: {}]   ;;  %s1499_s3 = inlined_call_operand.hbm [shape: f32[16,2048], index: 3, kind: output, shape index: {}]  }
   0x1   :  { %1508 = sst [smem:[#allocation13_spill]] %s1497_s1 }
   0x2   :  { %8 = vsyncpa [#allocation3], 0 }
   0x3   :  { %9 = vsyncpa [#allocation6], 0 }
   0x4   :  { %11 = vsyncpa [#allocation6 + $0x1], 0 }
   0x5   :  { %12 = vsyncpa [#allocation4], 0 }
   0x6   :  { %14 = vsyncpa [#allocation4 + $0x1], 0  ;;  %s1168_s12 = smov 0   ;;  %s1170_s13 = smov 0  }
   0x7   :  { %s1172_s14 = smov 0   ;;  %s1174_s15 = smov 0  }
   0x8   :  { %s1176_s16 = smov 0   ;;  %s1178_s17 = smov 0  }
   0x9 LB: > { %s29_s18 = sadd.s32 1, %s1129_s16  ;;  %s65_s19 = sadd.s32 1, %s1121_s14  ;;  %s1133_s17 = sphi %s1178_s17, %s20_s17   ;;  %s1129_s16 = sphi %s1176_s16, %s1532_s16   ;;  %s1125_s15 = sphi %s1174_s15, %s1531_s15   ;;  %s1121_s14 = sphi %s1172_s14, %s1530_s14   ;;  %s1117_s13 = sphi %s1170_s13, %s1529_s13   ;;  %s1113_s12 = sphi %s1168_s12, %s1528_s12  }
   0xa   : > { %p30_p0 = scmp.ge.s32.totalorder %s29_s18, 2  ;;  %p72_p1 = scmp.ne.s32.totalorder %s1121_s14, %s1117_s13 }
   0xb   : > { %p73_p2 = scmp.eq.s32.totalorder %s1133_s17, 0  ;;  %p898_p5 = scmp.lt.s32.totalorder %s1133_s17, 2 }
   0xc   : > { %s1534_s18 = smov (%p30_p0, %s29_s18), 0  ;;  %s172_s21 = sand.u32 1, %s1133_s17  }
   0xd   : > { %1509 = sst [smem:[#allocation12_spill]] %s1534_s18  ;;  %p74_p4 = por %p73_p2, %p72_p1 }
   0xe   : > { %s62_s20 = ssub.s32 %s1129_s16, %s1534_s18  ;;  %s174_s22 = sand.u32 1, %s1121_s14  }
   0xf   : > { %p63_p6 = scmp.eq.s32.totalorder %s62_s20, 0  ;;  %s837_s23 = sshll.u32 %s1129_s16, 10 }
  0x10   : > { %s813_s25 = sshll.u32 %s174_s22, 8  ;;  %s1510_s1 = sld [smem:[#allocation13_spill]] }
  0x11   : > { %s1216_s24 = scalar_select %p63_p6, %s1121_s14, %s65_s19  }
  0x12   : > { %p1225_p7 = pnand %p898_p5, %p74_p4  ;;  %s176_s30 = scalar_lea.vmem [#allocation5], %s813_s25 }
  0x13   : > { %s183_s4 = sshll.u32 %s176_s30, 4  ;;  %s1231_s5 = scalar_lea.sflag [#allocation6], %s172_s21  ;;  %s1229_s4 = int_to_ptr.vmem [resolvable:$true] %s183_s4 }
  0x14   : > { %s1511_s29 = scalar_select %p1225_p7, 1, 0 }
  0x15   : > { %p1502_p9 = pneg %p1225_p7 }
  0x16   : > { %s1223_s28 = scalar_lea.hbm %s1510_s1, %s837_s23  ;;  %s964_s9 = scalar_lea.hbm %s1510_s1, 8192 }
  0x17   : > { %s959_s6 = scalar_lea.hbm %s1223_s28, 4096  ;;  %p965_p12 = scmp.lt.u32.totalorder %s1223_s28, %s1510_s1 }
  0x18   : > { %p960_p8 = scmp.ne.s32.totalorder %s1223_s28, %s959_s6  ;;  %p966_p13 = scmp.lt.u32.totalorder %s964_s9, %s959_s6 }
  0x19   : > { %p968_p2 = scmp.lt.u32.totalorder %s959_s6, %s1223_s28 }
  0x1a   : > { %p962_p10 = pnand %p1502_p9, %p960_p8  ;;  %p967_p0 = por %p966_p13, %p965_p12 }
  0x1c   : > { %p963_p11 = pneg %p962_p10  ;;  %p969_p4 = por %p968_p2, %p967_p0 }
  0x1e   : > { %p970_p5 = pnand %p969_p4, %p963_p11 }
  0x20   : > { %973 = shalt.err (!%p970_p5)
}
  0x21   : > { %s974_s19 = scalar_lea.vmem %s1229_s4, 4096  ;;  %s1135_s20 = smov [#allocation5]  }
  0x22   : > { %p975_p6 = scmp.ne.s32.totalorder %s1229_s4, %s974_s19  ;;  %s979_s21 = sshll.u32 %s1135_s20, 4  ;;  %s980_s21 = int_to_ptr.vmem [resolvable:$false] %s979_s21 }
  0x23   : > { %s981_s23 = scalar_lea.vmem %s980_s21, 8192  ;;  %p982_p3 = scmp.lt.s32.totalorder %s1229_s4, %s980_s21 }
  0x24   : > { %p977_p8 = pnand %p975_p6, %p1502_p9  ;;  %p983_p12 = scmp.lt.s32.totalorder %s981_s23, %s974_s19 }
  0x26   : > { %p978_p10 = pneg %p977_p8  ;;  %p984_p13 = por %p983_p12, %p982_p3 }
  0x28   : > { %p985_p0 = pnand %p984_p13, %p978_p10 }
  0x2a   : > { %988 = shalt.err (!%p985_p0)
}
  0x2b   : > { %s1136_s25 = smov 2048   ;;  %s1137_s26 = smov 1024  }
  0x2c   : > { %s1138_s27 = smov 64   ;;  %s1260_s30 = sadd.s32 4294967295, %s1133_s17  }
  0x2d   : > { %889 = dma.hbm_to_vmem [thread:$0]  (!%p1225_p7), %s1223_s28, 4096, %s1229_s4, %s1231_s5, %s1136_s25, %s1137_s26, %s1138_s27  }
  0x2e   : > { %s809_s6 = sadd.s32 4294967294, %s1133_s17   ;;  %p78_p3 = scmp.ne.s32.totalorder %s1117_s13, %s1113_s12 }
  0x2f   : > { %p1501_p11 = scmp.eq.s32.totalorder %s1260_s30, 0  ;;  %p130_p2 = scmp.eq.s32.totalorder %s1260_s30, 1 }
  0x30   : > { %p136_p4 = scmp.eq.s32.totalorder %s809_s6, 1  ;;  %p810_p6 = scmp.ge.s32.totalorder %s1133_s17, 1 }
  0x31   : > { %p1269_p5 = por %p1501_p11, %p78_p3  ;;  %p1277_p8 = por %p130_p2, %p72_p1 }
  0x32   : > { %p1281_p10 = por %p136_p4, %p78_p3  ;;  %p143_p12 = scmp.lt.s32.totalorder %s1133_s17, 3 }
  0x33   : > { %s1512_s7 = scalar_select %p1269_p5, 1, 0 }
  0x34   : > { %s1513_s28 = scalar_select %p1277_p8, 1, 0 }
  0x35   : > { %s1514_s4 = scalar_select %p1281_p10, 1, 0 }
  0x36   : > { %p1286_p13 = pnand %p810_p6, %p143_p12  ;;  %s1139_s9 = smov [#allocation2]  }
  0x37   : > { %s158_s10 = sshll.u32 %s1139_s9, 4  ;;  %s816_s11 = sshll.u32 %s174_s22, 3  ;;  %s1290_s10 = int_to_ptr.vmem [resolvable:$true] %s158_s10 }
  0x38   : > { %s1515_s8 = scalar_select %p1286_p13, 1, 0 }
  0x39   : > { %p882_p0 = pneg %p1286_p13  ;;  %s838_s19 = sshll.u32 %s1129_s16, 7 }
  0x3a   : > { %s1306_s25 = scalar_lea.hbm %s1498_s2, %s838_s19  ;;  %s197_s26 = scalar_lea.vmem [#allocation7], %s816_s11 }
  0x3b   : > { %p1299_p1 = pnand %p882_p0, %p1501_p11  ;;  %s205_s27 = sshll.u32 %s197_s26, 4  ;;  %s1308_s27 = int_to_ptr.vmem [resolvable:$true] %s205_s27 }
  0x3c   : > { %s989_s22 = scalar_lea.hbm %s1496_s0, 256 }
  0x3d   : > { %p990_p3 = scmp.ne.s32.totalorder %s1496_s0, %s989_s22  ;;  %p991_p2 = pneg %p1299_p1 }
  0x3e   : > { %p996_p12 = scmp.lt.u32.totalorder %s989_s22, %s1496_s0 }
  0x3f   : > { %p992_p4 = pnand %p991_p2, %p990_p3 }
  0x41   : > { %p993_p6 = pneg %p992_p4 }
  0x43   : > { %p998_p0 = pnand %p996_p12, %p993_p6 }
  0x45   : > { %1001 = shalt.err (!%p998_p0)
}
  0x46   : > { %s1002_s11 = scalar_lea.vmem %s1290_s10, 256  ;;  %p1010_p8 = scmp.lt.s32.totalorder %s1290_s10, %s1290_s10 }
  0x47   : > { %p1003_p11 = scmp.ne.s32.totalorder %s1290_s10, %s1002_s11  ;;  %p1011_p5 = scmp.lt.s32.totalorder %s1002_s11, %s1002_s11 }
  0x49   : > { %p1005_p9 = pnand %p1003_p11, %p991_p2  ;;  %p1012_p13 = por %p1011_p5, %p1010_p8 }
  0x4b   : > { %p1006_p10 = pneg %p1005_p9 }
  0x4d   : > { %p1013_p7 = pnand %p1012_p13, %p1006_p10 }
  0x4f   : > { %1016 = shalt.err (!%p1013_p7)
}
  0x50   : > { %s1140_s1 = smov 128   ;;  %s1141_s18 = smov 8  }
  0x51   : > { %885 = dma.hbm_to_vmem [thread:$0]  (!%p1299_p1), %s1496_s0, 256, %s1290_s10, [#allocation3], %s1140_s1, %s1140_s1, %s1141_s18  }
  0x52   : > { %s1017_s6 = scalar_lea.hbm %s1306_s25, 128  ;;  %p1517_p11 = scmp.ne.s32.totalorder %s1511_s29, 0 }
  0x53   : > { %p1018_p9 = scmp.ne.s32.totalorder %s1306_s25, %s1017_s6  ;;  %s1022_s21 = scalar_lea.hbm %s1498_s2, 256 }
  0x54   : > { %p1518_p5 = pneg %p1517_p11  ;;  %p1023_p10 = scmp.lt.u32.totalorder %s1306_s25, %s1498_s2 }
  0x55   : > { %p1024_p13 = scmp.lt.u32.totalorder %s1022_s21, %s1017_s6  ;;  %p1026_p2 = scmp.lt.u32.totalorder %s1017_s6, %s1306_s25 }
  0x56   : > { %p1020_p8 = pnand %p1018_p9, %p1518_p5 }
  0x57   : > { %p1025_p3 = por %p1024_p13, %p1023_p10 }
  0x58   : > { %p1021_p7 = pneg %p1020_p8 }
  0x59   : > { %p1027_p4 = por %p1026_p2, %p1025_p3 }
  0x5b   : > { %p1028_p6 = pnand %p1027_p4, %p1021_p7 }
  0x5d   : > { %1031 = shalt.err (!%p1028_p6)
}
  0x5e   : > { %s1032_s10 = scalar_lea.vmem %s1308_s27, 128  ;;  %p1519_p12 = pmov %p1518_p5 }
  0x5f   : > { %p1033_p1 = scmp.ne.s32.totalorder %s1308_s27, %s1032_s10  ;;  %s1142_s20 = smov [#allocation7]  }
  0x60   : > { %s1037_s1 = sshll.u32 %s1142_s20, 4  ;;  %s1038_s1 = int_to_ptr.vmem [resolvable:$false] %s1037_s1 }
  0x61   : > { %p1035_p0 = pnand %p1033_p1, %p1519_p12  ;;  %s1039_s18 = scalar_lea.vmem %s1038_s1, 256 }
  0x62   : > { %p1040_p5 = scmp.lt.s32.totalorder %s1308_s27, %s1038_s1  ;;  %p1041_p8 = scmp.lt.s32.totalorder %s1039_s18, %s1032_s10 }
  0x63   : > { %p1036_p9 = pneg %p1035_p0 }
  0x64   : > { %p1042_p10 = por %p1041_p8, %p1040_p5 }
  0x66   : > { %p1043_p13 = pnand %p1042_p10, %p1036_p9 }
  0x68   : > { %1046 = shalt.err (!%p1043_p13)
}
  0x69   : > { %892 = dma.hbm_to_vmem [thread:$0]  (!%p1517_p11), %s1306_s25, 128, %s1308_s27, %s1231_s5  }
  0x6a   : > { %p1520_p7 = scmp.ne.s32.totalorder %s1515_s8, 0 }
  0x6b   : > { %p1521_p3 = scmp.eq.s32.totalorder (!%p1520_p7), %s1260_s30, 0 }
  0x6c   : > { %214 = sbr.rel (%p1520_p7) target bundleno = 377 (0x179), region = 32 }
  0x73   : > { %1100 = dma.done.wait (%p1521_p3), [#allocation3], 256   ;;  %p1522_p2 = pmov %p1521_p3 }
  0x74   : > { %s220_s19 = sand.u32 1, %s1260_s30   ;;  %s1363_s26 = sand.u32 1, %s1117_s13  }
  0x75   : > { %1102 = vsyncadd (%p1522_p2), [#allocation3], 4294967040  ;;  %s821_s29 = sshll.u32 %s1363_s26, 8  ;;  %s221_s6 = scalar_lea.sflag [#allocation6], %s220_s19 }
  0x76   : > { %s1366_s9 = scalar_lea.vmem [#allocation5], %s821_s29  ;;  %p1523_p11 = scmp.ne.s32.totalorder %s1512_s7, 0 }
  0x78   : > { %1104 = dma.done.wait (%p1523_p11), %s221_s6, 4224  }
  0x79   : > { %1106 = vsyncadd (%p1523_p11), %s221_s6, 4294963072  ;;  %v1143_v0 = vmov 0.0   ;;  %v269_v1 = vld [vmem:[%s1366_s9 + $0x8] sm:$0xff]  ;;  %v271_v3 = vld [vmem:[%s1366_s9 + $0x18] sm:$0xff]  ;;  %vm342_vm0 = vcmask 261120   ;;  %v302_v51 = vlaneseq  ;;  %s822_s5 = sshll.u32 %s1363_s26, 3 }
  0x7a   : > { %413 = vmatprep.mubr.f32.mxu0 %v1143_v0  ;;  %490 = vmatprep.mubr.f32.mxu1 %v1143_v0  ;;  %v277_v2 = vld [vmem:[%s1366_s9 + $0x48] sm:$0xff]  ;;  %v279_v5 = vld [vmem:[%s1366_s9 + $0x58] sm:$0xff]  ;;  %v268_v6 = vld [vmem:[%s1366_s9] sm:$0xff]  ;;  %s233_s30 = scalar_lea.vmem [#allocation7], %s822_s5  ;;  %s823_s7 = sshll.u32 %s1363_s26, 7 }
  0x7b   : > { %v840_v4 = vpack.c.bf16 %v277_v2, %v269_v1  ;;  %v276_v7 = vld [vmem:[%s1366_s9 + $0x40] sm:$0xff]  ;;  %v848_v8 = vpack.c.bf16 %v279_v5, %v271_v3  ;;  %v270_v10 = vld [vmem:[%s1366_s9 + $0x10] sm:$0xff]  ;;  %v285_v12 = vld [vmem:[%s1366_s9 + $0x88] sm:$0xff]  ;;  %v303_v52 = vshrl.u32 %v302_v51, 7  ;;  %s1422_s8 = scalar_lea.vmem [#allocation8], %s823_s7  ;;  %s839_s25 = sshll.u32 %s1125_s15, 10 }
  0x7c   : > { %v842_v9 = vpack.c.bf16 %v276_v7, %v268_v6  ;;  %v278_v11 = vld [vmem:[%s1366_s9 + $0x50] sm:$0xff]  ;;  %v293_v14 = vld [vmem:[%s1366_s9 + $0xc8] sm:$0xff]  ;;  %v287_v15 = vld [vmem:[%s1366_s9 + $0x98] sm:$0xff]  ;;  %s690_s27 = sshll.u32 %s1422_s8, 4  ;;  %s1441_s15 = scalar_lea.hbm %s1499_s3, %s839_s25  ;;  %s1443_s27 = int_to_ptr.vmem [resolvable:$true] %s690_s27 }
  0x7d   : > { %841 = vmatprep.subr.bf16.mxu0 %v840_v4  ;;  %v850_v13 = vpack.c.bf16 %v278_v11, %v270_v10  ;;  %v295_v16 = vld [vmem:[%s1366_s9 + $0xd8] sm:$0xff]  ;;  %849 = vmatprep.subr.bf16.mxu1 %v848_v8  ;;  %v844_v17 = vpack.c.bf16 %v293_v14, %v285_v12  ;;  %v284_v19 = vld [vmem:[%s1366_s9 + $0x80] sm:$0xff]  ;;  %v286_v21 = vld [vmem:[%s1366_s9 + $0x90] sm:$0xff]  ;;  %v304_v53 = vsub.s32 0, %v303_v52  ;;  %v312_v55 = vsub.s32 2, %v303_v52  ;;  %s674_s23 = scalar_lea.sflag [#allocation4], %s1363_s26 }
  0x7e   : > { %843 = vmatpush1.bf16.msra.mxu0 %v842_v9  ;;  %v852_v18 = vpack.c.bf16 %v295_v16, %v287_v15  ;;  %v292_v20 = vld [vmem:[%s1366_s9 + $0xc0] sm:$0xff]  ;;  %v294_v23 = vld [vmem:[%s1366_s9 + $0xd0] sm:$0xff]  ;;  %v273_v24 = vld [vmem:[%s1366_s9 + $0x28] sm:$0xff]  ;;  %v308_v56 = vsub.s32 1, %v303_v52  ;;  %v316_v57 = vsub.s32 3, %v303_v52  ;;  %v320_v2 = vsub.s32 4, %v303_v52 }
  0x7f   : > { %851 = vmatpush1.bf16.msra.mxu1 %v850_v13  ;;  %v846_v22 = vpack.c.bf16 %v292_v20, %v284_v19  ;;  %845 = vmatprep.subr.bf16.mxu0 %v844_v17  ;;  %v854_v25 = vpack.c.bf16 %v294_v23, %v286_v21  ;;  %v281_v26 = vld [vmem:[%s1366_s9 + $0x68] sm:$0xff]  ;;  %v275_v27 = vld [vmem:[%s1366_s9 + $0x38] sm:$0xff]  ;;  %v272_v31 = vld [vmem:[%s1366_s9 + $0x20] sm:$0xff]  ;;  %v328_v6 = vsub.s32 6, %v303_v52  ;;  %v324_v7 = vsub.s32 5, %v303_v52  ;;  %s1047_s11 = scalar_lea.vmem %s1443_s27, 2048 }
  0x80   : > { %853 = vmatprep.subr.bf16.mxu1 %v852_v18  ;;  %v283_v28 = vld [vmem:[%s1366_s9 + $0x78] sm:$0xff]  ;;  %v856_v29 = vpack.c.bf16 %v281_v26, %v273_v24  ;;  %v280_v32 = vld [vmem:[%s1366_s9 + $0x60] sm:$0xff]  ;;  %v274_v33 = vld [vmem:[%s1366_s9 + $0x30] sm:$0xff]  ;;  %v332_v9 = vsub.s32 7, %v303_v52  ;;  %p1048_p4 = scmp.ne.s32.totalorder %s1443_s27, %s1047_s11  ;;  %p1524_p6 = scmp.ne.s32.totalorder %s1513_s28, 0 }
  0x81   : > { %v864_v30 = vpack.c.bf16 %v283_v28, %v275_v27  ;;  %v266_v34 = vld [vmem:[#allocation2] sm:$0xff]  ;;  %v858_v35 = vpack.c.bf16 %v280_v32, %v272_v31  ;;  %v289_v37 = vld [vmem:[%s1366_s9 + $0xa8] sm:$0xff]  ;;  %v291_v40 = vld [vmem:[%s1366_s9 + $0xb8] sm:$0xff]  ;;  %s1144_s10 = smov [#allocation8]  }
  0x82   : > { %847 = vmatpush1.bf16.msra.mxu0 %v846_v22  ;;  %v282_v36 = vld [vmem:[%s1366_s9 + $0x70] sm:$0xff]  ;;  %v297_v39 = vld [vmem:[%s1366_s9 + $0xe8] sm:$0xff]  ;;  %v299_v41 = vld [vmem:[%s1366_s9 + $0xf8] sm:$0xff]  ;;  %p1049_p1 = pnand %p1048_p4, %p1524_p6  ;;  %s1051_s20 = sshll.u32 %s1144_s10, 4  ;;  %s1052_s20 = int_to_ptr.vmem [resolvable:$false] %s1051_s20 }
  0x83   : > { %855 = vmatpush1.bf16.msra.mxu1 %v854_v25  ;;  %857 = vmatprep.subr.bf16.mxu0 %v856_v29  ;;  %v866_v38 = vpack.c.bf16 %v282_v36, %v274_v33  ;;  %v860_v42 = vpack.c.bf16 %v297_v39, %v289_v37  ;;  %v288_v43 = vld [vmem:[%s1366_s9 + $0xa0] sm:$0xff]  ;;  %v290_v45 = vld [vmem:[%s1366_s9 + $0xb0] sm:$0xff]  ;;  %v868_v46 = vpack.c.bf16 %v299_v41, %v291_v40  ;;  %v267_v48 = vld [vmem:[#allocation2 + $0x8] sm:$0xff]  ;;  %s1053_s1 = scalar_lea.vmem %s1052_s20, 4096  ;;  %p1054_p0 = scmp.lt.s32.totalorder %s1443_s27, %s1052_s20 }
  0x84   : > { %865 = vmatprep.subr.bf16.mxu1 %v864_v30  ;;  %v296_v44 = vld [vmem:[%s1366_s9 + $0xe0] sm:$0xff]  ;;  %v298_v47 = vld [vmem:[%s1366_s9 + $0xf0] sm:$0xff]  ;;  %p1050_p12 = pneg %p1049_p1  ;;  %p1055_p9 = scmp.lt.s32.totalorder %s1053_s1, %s1047_s11 }
  0x85   : > { %824 = vmatmul.mubr.msk.f32.vlgmr.msra.gmra.mrb[0].mxu0 %vm342_vm0, %v266_v34  ;;  %v862_v49 = vpack.c.bf16 %v296_v44, %v288_v43  ;;  %v870_v50 = vpack.c.bf16 %v298_v47, %v290_v45  ;;  %v300_v54 = vld [vmem:[%s233_s30] sm:$0xff] }
  0x86   : > { %826 = vmatmul.mubr.msk.f32.vlgmr.msra.gmra.mrb[0].mxu1 %vm342_vm0, %v266_v34  ;;  %859 = vmatpush1.bf16.msra.mxu0 %v858_v35  ;;  %v305_v58 = vrot.slane %v300_v54, %v304_v53  ;;  %v313_v59 = vrot.slane %v300_v54, %v312_v55  ;;  %v309_v60 = vrot.slane %v300_v54, %v308_v56  ;;  %p1056_p5 = por %p1055_p9, %p1054_p0 }
  0x87   : > { %867 = vmatpush1.bf16.msra.mxu1 %v866_v38  ;;  %419 = vmatprep.mubr.f32.mxu0 %v1143_v0  ;;  %v317_v61 = vrot.slane %v300_v54, %v316_v57  ;;  %v321_v14 = vrot.slane %v300_v54, %v320_v2  ;;  %v329_v18 = vrot.slane %v300_v54, %v328_v6 }
  0x88   : > { %496 = vmatprep.mubr.f32.mxu1 %v1143_v0  ;;  %861 = vmatprep.subr.bf16.mxu0 %v860_v42  ;;  %v325_v19 = vrot.slane %v300_v54, %v324_v7  ;;  %v333_v21 = vrot.slane %v300_v54, %v332_v9  ;;  %p1057_p8 = pnand %p1056_p5, %p1050_p12 }
  0x89   : > { %825 = vmatmul.mubr.msk.f32.gmra.mrb[2].mxu0 %vm342_vm0, %v267_v48  ;;  %869 = vmatprep.subr.bf16.mxu1 %v868_v46 }
  0x8a   : > { %827 = vmatmul.mubr.msk.f32.gmra.mrb[2].mxu1 %vm342_vm0, %v267_v48  ;;  %863 = vmatpush1.bf16.msra.mxu0 %v862_v49 }
  0x8b   : > { %871 = vmatpush1.bf16.msra.mxu1 %v870_v50  ;;  %567 = vmatprep.mubr.f32.mxu0 %v1143_v0 }
  0x8c   : > { %644 = vmatprep.mubr.f32.mxu1 %v1143_v0 }
  0x8d   : > { %828 = vmatmul.mubr.msk.f32.vlgmr.msra.gmra.mrb[4].mxu0 %vm342_vm0, %v266_v34 }
  0x8e   : > { %830 = vmatmul.mubr.msk.f32.vlgmr.msra.gmra.mrb[4].mxu1 %vm342_vm0, %v266_v34  ;;  %573 = vmatprep.mubr.f32.mxu0 %v1143_v0 }
  0x8f   : > { %650 = vmatprep.mubr.f32.mxu1 %v1143_v0 }
  0x91   : > { %829 = vmatmul.mubr.msk.f32.gmra.mrb[6].mxu0 %vm342_vm0, %v267_v48 }
  0x92   : > { %831 = vmatmul.mubr.msk.f32.gmra.mrb[6].mxu1 %vm342_vm0, %v267_v48 }
 0x158   : > { %v415_v62 = vpop.f32.mrb[0].mxu0 }
 0x159   : > { %v416_v63 = vadd.f32 %v415_v62, %v305_v58  ;;  %v492_v0 = vpop.f32.mrb[0].mxu1  ;;  %v417_v1 = vpop.f32.mrb[1].mxu0 }
 0x15a   : > { %v493_v3 = vadd.f32 %v492_v0, %v313_v59  ;;  %v418_v4 = vadd.f32 %v417_v1, %v309_v60  ;;  %v494_v5 = vpop.f32.mrb[1].mxu1 }
 0x15b   : > { %657 = vst [vmem:[%s1422_s8] sm:$0xff] %v416_v63  ;;  %v495_v8 = vadd.f32 %v494_v5, %v317_v61 }
 0x15c   : > { %659 = vst [vmem:[%s1422_s8 + $0x10] sm:$0xff] %v493_v3  ;;  %658 = vst [vmem:[%s1422_s8 + $0x8] sm:$0xff] %v418_v4  ;;  %v421_v10 = vpop.f32.mrb[2].mxu0 }
 0x15d   : > { %660 = vst [vmem:[%s1422_s8 + $0x18] sm:$0xff] %v495_v8  ;;  %v422_v11 = vadd.f32 %v421_v10, %v305_v58  ;;  %v498_v12 = vpop.f32.mrb[2].mxu1  ;;  %v423_v13 = vpop.f32.mrb[3].mxu0 }
 0x15e   : > { %v499_v15 = vadd.f32 %v498_v12, %v313_v59  ;;  %v424_v16 = vadd.f32 %v423_v13, %v309_v60  ;;  %v500_v17 = vpop.f32.mrb[3].mxu1 }
 0x15f   : > { %665 = vst [vmem:[%s1422_s8 + $0x40] sm:$0xff] %v422_v11  ;;  %v501_v20 = vadd.f32 %v500_v17, %v317_v61 }
 0x160   : > { %667 = vst [vmem:[%s1422_s8 + $0x50] sm:$0xff] %v499_v15  ;;  %666 = vst [vmem:[%s1422_s8 + $0x48] sm:$0xff] %v424_v16  ;;  %v569_v22 = vpop.f32.mrb[4].mxu0 }
 0x161   : > { %668 = vst [vmem:[%s1422_s8 + $0x58] sm:$0xff] %v501_v20  ;;  %v570_v23 = vadd.f32 %v569_v22, %v321_v14  ;;  %v646_v24 = vpop.f32.mrb[4].mxu1  ;;  %v571_v25 = vpop.f32.mrb[5].mxu0 }
 0x162   : > { %v647_v26 = vadd.f32 %v646_v24, %v329_v18  ;;  %v572_v27 = vadd.f32 %v571_v25, %v325_v19  ;;  %v648_v28 = vpop.f32.mrb[5].mxu1 }
 0x163   : > { %661 = vst [vmem:[%s1422_s8 + $0x20] sm:$0xff] %v570_v23  ;;  %v649_v29 = vadd.f32 %v648_v28, %v333_v21 }
 0x164   : > { %663 = vst [vmem:[%s1422_s8 + $0x30] sm:$0xff] %v647_v26  ;;  %662 = vst [vmem:[%s1422_s8 + $0x28] sm:$0xff] %v572_v27  ;;  %v575_v30 = vpop.f32.mrb[6].mxu0 }
 0x165   : > { %664 = vst [vmem:[%s1422_s8 + $0x38] sm:$0xff] %v649_v29  ;;  %v576_v31 = vadd.f32 %v575_v30, %v321_v14  ;;  %v652_v32 = vpop.f32.mrb[6].mxu1  ;;  %v577_v33 = vpop.f32.mrb[7].mxu0 }
 0x166   : > { %v653_v34 = vadd.f32 %v652_v32, %v329_v18  ;;  %v578_v35 = vadd.f32 %v577_v33, %v325_v19  ;;  %v654_v36 = vpop.f32.mrb[7].mxu1 }
 0x167   : > { %669 = vst [vmem:[%s1422_s8 + $0x60] sm:$0xff] %v576_v31  ;;  %v655_v37 = vadd.f32 %v654_v36, %v333_v21 }
 0x168   : > { %671 = vst [vmem:[%s1422_s8 + $0x70] sm:$0xff] %v653_v34  ;;  %670 = vst [vmem:[%s1422_s8 + $0x68] sm:$0xff] %v578_v35 }
 0x169   : > { %672 = vst [vmem:[%s1422_s8 + $0x78] sm:$0xff] %v655_v37 }
 0x16a   : > { %1060 = shalt.err (!%p1057_p8)
}
 0x16b   : > { %s1061_s18 = scalar_lea.hbm %s1441_s15, 2048  ;;  %s1065_s6 = scalar_lea.hbm %s1499_s3, 4096 }
 0x16c   : > { %p1062_p10 = scmp.ne.s32.totalorder %s1441_s15, %s1061_s18  ;;  %p1066_p3 = scmp.lt.u32.totalorder %s1441_s15, %s1499_s3 }
 0x16d   : > { %p1067_p2 = scmp.lt.u32.totalorder %s1065_s6, %s1061_s18  ;;  %p1069_p4 = scmp.lt.u32.totalorder %s1061_s18, %s1441_s15 }
 0x16e   : > { %p1063_p13 = pnand %p1062_p10, %p1524_p6 }
 0x16f   : > { %p1068_p11 = por %p1067_p2, %p1066_p3 }
 0x170   : > { %p1064_p7 = pneg %p1063_p13 }
 0x171   : > { %p1070_p1 = por %p1069_p4, %p1068_p11 }
 0x173   : > { %p1071_p12 = pnand %p1070_p1, %p1064_p7 }
 0x175   : > { %1074 = shalt.err (!%p1071_p12)
}
 0x176   : > { %s1145_s30 = smov 1024   ;;  %s1146_s7 = smov 2048  }
 0x177   : > { %s1147_s8 = smov 64  }
 0x178   : > { %880 = dma.vmem_to_hbm [thread:$0]  (%p1524_p6), %s1443_s27, 2048, %s1441_s15, %s674_s23, %s1145_s30, %s1146_s7, %s1147_s8  }
 0x179 PF: > { %s705_s25 = sand.u32 1, %s1113_s12   ;;  %p1525_p0 = scmp.ne.s32.totalorder %s1514_s4, 0 }
 0x17a   : > { %p1526_p9 = scmp.ge.s32.totalorder %s1133_s17, 2  ;;  %s706_s22 = scalar_lea.sflag [#allocation4], %s705_s25 }
 0x17c   : > { %p894_p5 = pnand %p1526_p9, %p1525_p0 }
 0x17e   : > { %1108 = dma.done.wait (!%p894_p5), %s706_s22, 2048  }
 0x17f   : > { %1110 = vsyncadd (!%p894_p5), %s706_s22, 4294965248  ;;  %s20_s17 = sadd.s32 1, %s1133_s17   ;;  %s1527_s28 = sld [smem:[#allocation12_spill]] }
 0x180   : > { %p17_p8 = scmp.ge.s32.totalorder %s20_s17, 4   ;;  %s1528_s12 = smov %s1117_s13 }
 0x181   : > { %s1529_s13 = smov %s1121_s14  ;;  %s1530_s14 = smov %s1216_s24 }
 0x182   : > { %s1531_s15 = smov %s1129_s16  ;;  %19 = sbr.rel (!%p17_p8) target bundleno = 9 (0x9), region = 94 }
 0x185   : > { %s1532_s16 = smov %s1527_s28 }
 0x189   :  { %711 = vsyncpa [#allocation3], 1 }
 0x18a   :  { %713 = vsyncpa [#allocation3 + $0x1], 1 }
 0x18b   :  { %714 = vsyncpa [#allocation6], 1 }
 0x18c   :  { %716 = vsyncpa [#allocation6 + $0x1], 1 }
 0x18d   :  { %717 = vsyncpa [#allocation4], 1 }
 0x18e   :  { %719 = vsyncpa [#allocation4 + $0x1], 1 }

</bundles_post_ra>
